<compile_context>
chip_gen: v7x
topology: tpu7x:2x2x1
jax: 0.10.0
libtpu: 0.0.40
codegen_flags: <defaults>
</compile_context>

<pallas_src>
import numpy as np
import jax
import jax.numpy as jnp
from jax.experimental import pallas as pl
from jax.experimental.pallas import tpu as pltpu


# ----------------------------------------------------------------------------
# Pallas kernel: one row-tile of   relu(relu(x@W0+b0)@W1+b1)@W2+b2
# ----------------------------------------------------------------------------
def fnn_kernel(x_ref, w0_ref, b0_ref, w1_ref, b1_ref, w2_ref, b2_ref, o_ref):
    x = x_ref[...]
    h = jnp.maximum(
        jnp.dot(x, w0_ref[...], preferred_element_type=jnp.float32) + b0_ref[...], 0.0)
    h = jnp.maximum(
        jnp.dot(h, w1_ref[...], preferred_element_type=jnp.float32) + b1_ref[...], 0.0)
    out = jnp.dot(h, w2_ref[...], preferred_element_type=jnp.float32) + b2_ref[...]
    o_ref[...] = out.astype(o_ref.dtype)


# ----------------------------------------------------------------------------
# Wrapper: row-tiled grid, weights resident across the grid.
# ----------------------------------------------------------------------------
def fnn_forward(params, x, *, row_tile=128):
    N, D = x.shape
    H = params["W0"].shape[1]
    O = params["W2"].shape[1]

    # Pad the row axis up to a multiple of the tile so every grid step is full.
    n_pad = (-N) % row_tile
    if n_pad:
        x = jnp.pad(x, ((0, n_pad), (0, 0)))
    Np = N + n_pad
    grid = (Np // row_tile,)

    row_in = pl.BlockSpec((row_tile, D), lambda i: (i, 0))
    row_out = pl.BlockSpec((row_tile, O), lambda i: (i, 0))
    # Constant block index -> weight/bias tiles are DMA'd once and stay in VMEM.
    resident = lambda shape: pl.BlockSpec(shape, lambda i: (0, 0))

    out = pl.pallas_call(
        fnn_kernel,
        out_shape=jax.ShapeDtypeStruct((Np, O), jnp.float32),
        grid=grid,
        in_specs=[
            row_in,
            resident((D, H)), resident((1, H)),
            resident((H, H)), resident((1, H)),
            resident((H, O)), resident((1, O)),
        ],
        out_specs=row_out,
        compiler_params=pltpu.CompilerParams(
            dimension_semantics=("parallel",)),  # dual-TC sharding on v7x
    )(x, params["W0"], params["b0"], params["W1"], params["b1"],
      params["W2"], params["b2"])
    return out[:N]


# ----------------------------------------------------------------------------
# Deterministic parameter init (PyTorch nn.Linear-style uniform init), with
# weights stored pre-transposed as (in_features, out_features).
# ----------------------------------------------------------------------------
def init_params(key, input_dim, hidden_dim, output_dim):
    def lin(k, fan_in, fan_out):
        kw, kb = jax.random.split(k)
        bound = 1.0 / np.sqrt(fan_in)
        w = jax.random.uniform(kw, (fan_in, fan_out), jnp.float32, -bound, bound)
        b = jax.random.uniform(kb, (1, fan_out), jnp.float32, -bound, bound)
        return w, b

    k0, k1, k2 = jax.random.split(key, 3)
    W0, b0 = lin(k0, input_dim, hidden_dim)
    W1, b1 = lin(k1, hidden_dim, hidden_dim)
    W2, b2 = lin(k2, hidden_dim, output_dim)
    return dict(W0=W0, b0=b0, W1=W1, b1=b1, W2=W2, b2=b2)


# ----------------------------------------------------------------------------
# Pure-JAX reference for validation.
# ----------------------------------------------------------------------------
def reference_forward(params, x):
    h = jnp.maximum(x @ params["W0"] + params["b0"], 0.0)
    h = jnp.maximum(h @ params["W1"] + params["b1"], 0.0)
    return h @ params["W2"] + params["b2"]


if __name__ == "__main__":
    # Small, lane-friendly shapes: output_dim = 128 keeps stores full-lane;
    # batch = 200 exercises the padding path (padded to 256 = 2 tiles of 128).
    input_dim, hidden_dim, output_dim = 64, 128, 128
    batch = 200

    key = jax.random.PRNGKey(0)
    kp, kx = jax.random.split(key)
    params = init_params(kp, input_dim, hidden_dim, output_dim)
    x = jax.random.normal(kx, (batch, input_dim), jnp.float32)

    y = fnn_forward(params, x)
    jax.block_until_ready(y)

    y_ref = reference_forward(params, x)
    assert y.shape == (batch, output_dim)
    np.testing.assert_allclose(np.asarray(y), np.asarray(y_ref), rtol=1e-4, atol=1e-4)

    # TODO(synk): weights could be stored/cast to bf16 on v6e/v7x for ~2x MXU
    # throughput and half the resident VMEM; kept f32 here for tight validation.
    print("KERNEL_OK")
</pallas_src>

<mosaic_0001>
module attributes {stable_mosaic.version = 11 : i64} {
  func.func @fnn_kernel(%arg0: i32, %arg1: memref<128x64xf32, #tpu.memory_space<vmem>>, %arg2: memref<64x128xf32, #tpu.memory_space<vmem>>, %arg3: memref<1x128xf32, #tpu.memory_space<vmem>>, %arg4: memref<128x128xf32, #tpu.memory_space<vmem>>, %arg5: memref<1x128xf32, #tpu.memory_space<vmem>>, %arg6: memref<128x128xf32, #tpu.memory_space<vmem>>, %arg7: memref<1x128xf32, #tpu.memory_space<vmem>>, %arg8: memref<128x128xf32, #tpu.memory_space<vmem>>) attributes {dimension_semantics = [#tpu.dimension_semantics<parallel>], iteration_bounds = array<i64: 2>, scalar_prefetch = 0 : i64, scratch_operands = 0 : i64, tpu.core_type = #tpu.core_type<tc>, window_params = [{transform_indices = @transform_0, window_bounds = array<i64: 128, 64>}, {pipeline_mode = #tpu.pipeline_mode<synchronous>, transform_indices = @transform_1, window_bounds = array<i64: 64, 128>}, {pipeline_mode = #tpu.pipeline_mode<synchronous>, transform_indices = @transform_2, window_bounds = array<i64: 1, 128>}, {pipeline_mode = #tpu.pipeline_mode<synchronous>, transform_indices = @transform_3, window_bounds = array<i64: 128, 128>}, {pipeline_mode = #tpu.pipeline_mode<synchronous>, transform_indices = @transform_4, window_bounds = array<i64: 1, 128>}, {pipeline_mode = #tpu.pipeline_mode<synchronous>, transform_indices = @transform_5, window_bounds = array<i64: 128, 128>}, {pipeline_mode = #tpu.pipeline_mode<synchronous>, transform_indices = @transform_6, window_bounds = array<i64: 1, 128>}, {transform_indices = @transform_7, window_bounds = array<i64: 128, 128>}]} {
    %c0 = arith.constant 0 : index
    %c0_0 = arith.constant 0 : index
    %0 = vector.load %arg1[%c0, %c0_0] : memref<128x64xf32, #tpu.memory_space<vmem>>, vector<128x64xf32>
    %c0_1 = arith.constant 0 : index
    %c0_2 = arith.constant 0 : index
    %1 = vector.load %arg2[%c0_1, %c0_2] : memref<64x128xf32, #tpu.memory_space<vmem>>, vector<64x128xf32>
    %cst = arith.constant dense<0.000000e+00> : vector<128x128xf32>
    %2 = tpu.matmul %0, %1, %cst {dimension_numbers = #tpu.dot_dimension_numbers<[1], [0], [0], [1], [0, 0, 1, 1], [], []>} : vector<128x64xf32>, vector<64x128xf32>, vector<128x128xf32> -> vector<128x128xf32>
    %c0_3 = arith.constant 0 : index
    %c0_4 = arith.constant 0 : index
    %3 = vector.load %arg3[%c0_3, %c0_4] : memref<1x128xf32, #tpu.memory_space<vmem>>, vector<1x128xf32>
    %4 = vector.broadcast %3 : vector<1x128xf32> to vector<128x128xf32>
    %5 = arith.addf %2, %4 : vector<128x128xf32>
    %cst_5 = arith.constant 0.000000e+00 : f32
    %6 = vector.broadcast %cst_5 : f32 to vector<128x128xf32>
    %7 = arith.maximumf %5, %6 : vector<128x128xf32>
    %c0_6 = arith.constant 0 : index
    %c0_7 = arith.constant 0 : index
    %8 = vector.load %arg4[%c0_6, %c0_7] : memref<128x128xf32, #tpu.memory_space<vmem>>, vector<128x128xf32>
    %cst_8 = arith.constant dense<0.000000e+00> : vector<128x128xf32>
    %9 = tpu.matmul %7, %8, %cst_8 {dimension_numbers = #tpu.dot_dimension_numbers<[1], [0], [0], [1], [0, 0, 1, 1], [], []>} : vector<128x128xf32>, vector<128x128xf32>, vector<128x128xf32> -> vector<128x128xf32>
    %c0_9 = arith.constant 0 : index
    %c0_10 = arith.constant 0 : index
    %10 = vector.load %arg5[%c0_9, %c0_10] : memref<1x128xf32, #tpu.memory_space<vmem>>, vector<1x128xf32>
    %11 = vector.broadcast %10 : vector<1x128xf32> to vector<128x128xf32>
    %12 = arith.addf %9, %11 : vector<128x128xf32>
    %cst_11 = arith.constant 0.000000e+00 : f32
    %13 = vector.broadcast %cst_11 : f32 to vector<128x128xf32>
    %14 = arith.maximumf %12, %13 : vector<128x128xf32>
    %c0_12 = arith.constant 0 : index
    %c0_13 = arith.constant 0 : index
    %15 = vector.load %arg6[%c0_12, %c0_13] : memref<128x128xf32, #tpu.memory_space<vmem>>, vector<128x128xf32>
    %cst_14 = arith.constant dense<0.000000e+00> : vector<128x128xf32>
    %16 = tpu.matmul %14, %15, %cst_14 {dimension_numbers = #tpu.dot_dimension_numbers<[1], [0], [0], [1], [0, 0, 1, 1], [], []>} : vector<128x128xf32>, vector<128x128xf32>, vector<128x128xf32> -> vector<128x128xf32>
    %c0_15 = arith.constant 0 : index
    %c0_16 = arith.constant 0 : index
    %17 = vector.load %arg7[%c0_15, %c0_16] : memref<1x128xf32, #tpu.memory_space<vmem>>, vector<1x128xf32>
    %18 = vector.broadcast %17 : vector<1x128xf32> to vector<128x128xf32>
    %19 = arith.addf %16, %18 : vector<128x128xf32>
    %c0_17 = arith.constant 0 : index
    %c0_18 = arith.constant 0 : index
    %20 = vector.load %arg8[%c0_17, %c0_18] : memref<128x128xf32, #tpu.memory_space<vmem>>, vector<128x128xf32>
    tpu.vector_store %arg8[%c0_17, %c0_18], %19 {strides = array<i32>} : memref<128x128xf32, #tpu.memory_space<vmem>>, vector<128x128xf32>,
    return
  }
  func.func @transform_0(%arg0: i32) -> (i32, i32) {
    %c0_i32 = arith.constant 0 : i32
    %c0_i32_0 = arith.constant 0 : i32
    return %arg0, %c0_i32 : i32, i32
  }
  func.func @transform_1(%arg0: i32) -> (i32, i32) {
    %c0_i32 = arith.constant 0 : i32
    %c0_i32_0 = arith.constant 0 : i32
    %c0_i32_1 = arith.constant 0 : i32
    return %c0_i32, %c0_i32_0 : i32, i32
  }
  func.func @transform_2(%arg0: i32) -> (i32, i32) {
    %c0_i32 = arith.constant 0 : i32
    %c0_i32_0 = arith.constant 0 : i32
    %c0_i32_1 = arith.constant 0 : i32
    return %c0_i32, %c0_i32_0 : i32, i32
  }
  func.func @transform_3(%arg0: i32) -> (i32, i32) {
    %c0_i32 = arith.constant 0 : i32
    %c0_i32_0 = arith.constant 0 : i32
    %c0_i32_1 = arith.constant 0 : i32
    return %c0_i32, %c0_i32_0 : i32, i32
  }
  func.func @transform_4(%arg0: i32) -> (i32, i32) {
    %c0_i32 = arith.constant 0 : i32
    %c0_i32_0 = arith.constant 0 : i32
    %c0_i32_1 = arith.constant 0 : i32
    return %c0_i32, %c0_i32_0 : i32, i32
  }
  func.func @transform_5(%arg0: i32) -> (i32, i32) {
    %c0_i32 = arith.constant 0 : i32
    %c0_i32_0 = arith.constant 0 : i32
    %c0_i32_1 = arith.constant 0 : i32
    return %c0_i32, %c0_i32_0 : i32, i32
  }
  func.func @transform_6(%arg0: i32) -> (i32, i32) {
    %c0_i32 = arith.constant 0 : i32
    %c0_i32_0 = arith.constant 0 : i32
    %c0_i32_1 = arith.constant 0 : i32
    return %c0_i32, %c0_i32_0 : i32, i32
  }
  func.func @transform_7(%arg0: i32) -> (i32, i32) {
    %c0_i32 = arith.constant 0 : i32
    %c0_i32_0 = arith.constant 0 : i32
    return %arg0, %c0_i32 : i32, i32
  }
}

</mosaic_0001>

<bundles_post_ra>
// kernel: tpu_custom_call.1
= control target key start
LH: loop header
LB: loop body
LE: loop exit
PB: predicated region body
PF: predicated region fallthrough
CT: control target
= control target key end

     0   :  { %12 = vsyncpa [#allocation3], 0  ;;  %s1811_s0 = inlined_call_operand.vmem [shape: f32[256,64], index: 0, kind: input, shape index: {}]   ;;  %s1812_s1 = inlined_call_operand.vmem [shape: f32[64,128], index: 1, kind: input, shape index: {}]   ;;  %s1813_s2 = inlined_call_operand.vmem [shape: f32[1,128], index: 2, kind: input, shape index: {}]   ;;  %s1814_s3 = inlined_call_operand.vmem [shape: f32[128,128], index: 3, kind: input, shape index: {}]   ;;  %s1815_s4 = inlined_call_operand.vmem [shape: f32[1,128], index: 4, kind: input, shape index: {}]   ;;  %s1816_s5 = inlined_call_operand.vmem [shape: f32[128,128], index: 5, kind: input, shape index: {}]   ;;  %s1817_s6 = inlined_call_operand.vmem [shape: f32[1,128], index: 6, kind: input, shape index: {}]   ;;  %s1818_s7 = inlined_call_operand.hbm [shape: f32[256,128], index: 7, kind: output, shape index: {}]  }
   0x1   :  { %14 = vsyncpa [#allocation3 + $0x1], 0  ;;  %s1481_s24 = smov 0   ;;  %s1483_s25 = smov 0  }
   0x2   :  { %s1485_s26 = smov 0   ;;  %s1487_s27 = smov 0  }
   0x3 LB: > { %s1502_s28 = sadd.s32 4294967295, %s1436_s27   ;;  %s965_s29 = sadd.s32 4294967294, %s1436_s27   ;;  %s1436_s27 = sphi %s1487_s27, %s1824_s27   ;;  %s1432_s26 = sphi %s1485_s26, %s1823_s26   ;;  %s1428_s25 = sphi %s1483_s25, %s1822_s25   ;;  %s1424_s24 = sphi %s1481_s24, %s1821_s24  }
   0x4   : > { %s1506_s30 = sadd.s32 1, %s1436_s27   ;;  %s179_s8 = sadd.s32 1, %s1432_s26 }
   0x5   : > { %s176_s9 = ssub.s32 %s1436_s27, %s1506_s30  ;;  %p189_p0 = scmp.ne.s32.totalorder %s1432_s26, %s1428_s25 }
   0x6   : > { %p177_p1 = scmp.eq.s32.totalorder %s176_s9, 0  ;;  %p190_p2 = scmp.eq.s32.totalorder %s1502_s28, 1 }
   0x7   : > { %p195_p3 = scmp.ne.s32.totalorder %s1428_s25, %s1424_s24  ;;  %p196_p4 = scmp.eq.s32.totalorder %s965_s29, 1 }
   0x8   : > { %s1517_s10 = scalar_select %p177_p1, %s1432_s26, %s179_s8  }
   0x9   : > { %p1519_p5 = por %p190_p2, %p189_p0  ;;  %p1523_p6 = por %p196_p4, %p195_p3 }
   0xa   : > { %p968_p7 = scmp.ge.s32.totalorder %s1436_s27, 1  ;;  %p241_p8 = scmp.lt.s32.totalorder %s1436_s27, 3 }
   0xc   : > { %p242_p9 = pnand %p968_p7, %p241_p8 }
   0xd   : > { %v296_v0 = vld [vmem:[%s1812_s1] sm:$0xff] (!%p242_p9)  ;;  %v297_v1 = vld [vmem:[%s1812_s1 + $0x8] sm:$0xff] (!%p242_p9)  ;;  %v298_v2 = vld [vmem:[%s1812_s1 + $0x10] sm:$0xff] (!%p242_p9)  ;;  %s970_s19 = sshll.u32 (!%p242_p9), %s1502_s28, 4  ;;  %vm311_vm0 = vcmask (!%p242_p9), 523264   ;;  %s270_s20 = sand.u32 (!%p242_p9), 1, %s1428_s25  }
   0xe   : > { %245 = sbr.rel (%p242_p9) target bundleno = 726 (0x2d6), region = 48  ;;  %v1237_v3 = vpack.c.bf16 (!%p242_p9), %v297_v1, %v296_v0  ;;  %v299_v4 = vld [vmem:[%s1812_s1 + $0x18] sm:$0xff] (!%p242_p9)  ;;  %p274_p10 = scmp.lt.s32.totalorder (!%p242_p9), %s970_s19, 31  ;;  %v300_v6 = vld [vmem:[%s1812_s1 + $0x20] sm:$0xff] (!%p242_p9)  ;;  %v301_v7 = vld [vmem:[%s1812_s1 + $0x28] sm:$0xff] (!%p242_p9) }
   0xf   : > { %v1241_v5 = vpack.c.bf16 (!%p242_p9), %v299_v4, %v298_v2  ;;  %v521_v8 = vld [vmem:[%s1814_s3] sm:$0xff] (!%p242_p9)  ;;  %v522_v9 = vld [vmem:[%s1814_s3 + $0x8] sm:$0xff] (!%p242_p9)  ;;  %v523_v10 = vld [vmem:[%s1814_s3 + $0x10] sm:$0xff] (!%p242_p9)  ;;  %v1245_v13 = vpack.c.bf16 (!%p242_p9), %v301_v7, %v300_v6  ;;  %s969_s22 = sshll.u32 (!%p242_p9), %s270_s20, 7  ;;  %s996_s8 = sshll.u32 (!%p242_p9), %s1502_s28, 11 }
  0x10   : > { %1238 = vmatprep.subr.bf16.mxu0 (!%p242_p9), %v1237_v3  ;;  %v524_v11 = vld [vmem:[%s1814_s3 + $0x18] sm:$0xff] (!%p242_p9)  ;;  %v1253_v12 = vpack.c.bf16 (!%p242_p9), %v522_v9, %v521_v8  ;;  %v525_v15 = vld [vmem:[%s1814_s3 + $0x20] sm:$0xff] (!%p242_p9)  ;;  %v526_v16 = vld [vmem:[%s1814_s3 + $0x28] sm:$0xff] (!%p242_p9)  ;;  %s1741_s29 = scalar_lea.vmem (!%p242_p9), [#allocation2], %s969_s22  ;;  %s1762_s15 = scalar_lea.hbm (!%p242_p9), %s1818_s7, %s996_s8 }
  0x11   : > { %1240 = vmatpush3.bf16.msra.mxu0 (!%p242_p9), %v1237_v3  ;;  %v1257_v14 = vpack.c.bf16 (!%p242_p9), %v524_v11, %v523_v10  ;;  %v302_v17 = vld [vmem:[%s1812_s1 + $0x30] sm:$0xff] (!%p242_p9)  ;;  %v303_v18 = vld [vmem:[%s1812_s1 + $0x38] sm:$0xff] (!%p242_p9)  ;;  %v1261_v20 = vpack.c.bf16 (!%p242_p9), %v526_v16, %v525_v15  ;;  %v529_v25 = vld [vmem:[%s1814_s3 + $0x40] sm:$0xff] (!%p242_p9)  ;;  %s903_s9 = sshll.u32 (!%p242_p9), %s1741_s29, 4  ;;  %s1770_s28 = scalar_lea.sflag (!%p242_p9), [#allocation3], %s270_s20  ;;  %s1764_s9 = int_to_ptr.vmem [resolvable:$true] %s903_s9 }
  0x12   : > { %1242 = vmatprep.subr.bf16.mxu0 (!%p242_p9), %v1241_v5  ;;  %1254 = vmatprep.subr.bf16.mxu1 (!%p242_p9), %v1253_v12  ;;  %v1249_v21 = vpack.c.bf16 (!%p242_p9), %v303_v18, %v302_v17  ;;  %v527_v22 = vld [vmem:[%s1814_s3 + $0x30] sm:$0xff] (!%p242_p9)  ;;  %v528_v23 = vld [vmem:[%s1814_s3 + $0x38] sm:$0xff] (!%p242_p9)  ;;  %v530_v26 = vld [vmem:[%s1814_s3 + $0x48] sm:$0xff] (!%p242_p9)  ;;  %s1438_s16 = smov (!%p242_p9), [#allocation2]  }
  0x13   : > { %1256 = vmatpush3.bf16.msra.mxu1 (!%p242_p9), %v1253_v12  ;;  %v1265_v24 = vpack.c.bf16 (!%p242_p9), %v528_v23, %v527_v22  ;;  %v1269_v28 = vpack.c.bf16 (!%p242_p9), %v530_v26, %v529_v25  ;;  %v531_v30 = vld [vmem:[%s1814_s3 + $0x50] sm:$0xff] (!%p242_p9)  ;;  %v532_v31 = vld [vmem:[%s1814_s3 + $0x58] sm:$0xff] (!%p242_p9)  ;;  %v533_v35 = vld [vmem:[%s1814_s3 + $0x60] sm:$0xff] (!%p242_p9) }
  0x14   : > { %1258 = vmatprep.subr.bf16.mxu1 (!%p242_p9), %v1257_v14  ;;  %v1273_v33 = vpack.c.bf16 (!%p242_p9), %v532_v31, %v531_v30  ;;  %v534_v36 = vld [vmem:[%s1814_s3 + $0x68] sm:$0xff] (!%p242_p9)  ;;  %v535_v49 = vld [vmem:[%s1814_s3 + $0x70] sm:$0xff] (!%p242_p9)  ;;  %v536_v50 = vld [vmem:[%s1814_s3 + $0x78] sm:$0xff] (!%p242_p9) }
  0x15   : > { %s1826_s19 = smov (!%p274_p10, %s970_s19), 31  ;;  %1244 = vmatpush3.bf16.msra.mxu0 %v1241_v5  ;;  %v1277_v38 = vpack.c.bf16 %v534_v36, %v533_v35  ;;  %v1281_v51 = vpack.c.bf16 %v536_v50, %v535_v49  ;;  %v705_v52 = vld [vmem:[%s1816_s5] sm:$0xff]  ;;  %v706_v53 = vld [vmem:[%s1816_s5 + $0x8] sm:$0xff]  ;;  %v707_v54 = vld [vmem:[%s1816_s5 + $0x10] sm:$0xff] }
  0x16   : > { %s971_s21 = sshll.u32 %s1826_s19, 3  ;;  %1246 = vmatprep.subr.bf16.mxu0 %v1245_v13  ;;  %v1285_v55 = vpack.c.bf16 %v706_v53, %v705_v52  ;;  %v708_v56 = vld [vmem:[%s1816_s5 + $0x18] sm:$0xff]  ;;  %v709_v58 = vld [vmem:[%s1816_s5 + $0x20] sm:$0xff]  ;;  %v710_v59 = vld [vmem:[%s1816_s5 + $0x28] sm:$0xff]  ;;  %s1378_s19 = sshll.u32 %s1438_s16, 4  ;;  %s1379_s19 = int_to_ptr.vmem [resolvable:$false] %s1378_s19 }
  0x17   : > { %s1575_s17 = scalar_lea.vmem %s1811_s0, %s971_s21  ;;  %1260 = vmatpush3.bf16.msra.mxu1 %v1257_v14  ;;  %v1289_v57 = vpack.c.bf16 %v708_v56, %v707_v54  ;;  %v1293_v60 = vpack.c.bf16 %v710_v59, %v709_v58  ;;  %v711_v61 = vld [vmem:[%s1816_s5 + $0x30] sm:$0xff]  ;;  %v712_v62 = vld [vmem:[%s1816_s5 + $0x38] sm:$0xff]  ;;  %v713_v0 = vld [vmem:[%s1816_s5 + $0x40] sm:$0xff]  ;;  %s1380_s18 = scalar_lea.vmem %s1379_s19, 4096 }
  0x18   : > { %v280_v19 = vld [vmem:[%s1575_s17] sm:$0xff]  ;;  %1262 = vmatprep.subr.bf16.mxu1 %v1261_v20  ;;  %v281_v27 = vld [vmem:[%s1575_s17 + $0x8] sm:$0xff]  ;;  %v282_v29 = vld [vmem:[%s1575_s17 + $0x10] sm:$0xff]  ;;  %v1663_v63 = vpack.c.bf16 %v712_v62, %v711_v61  ;;  %p1381_p0 = scmp.lt.s32.totalorder %s1764_s9, %s1379_s19 }
  0x19   : > { %1101 = vmatprep.mubr.msk.f32.mxu0 %vm311_vm0, %v280_v19  ;;  %1248 = vmatpush3.bf16.msra.mxu0 %v1245_v13  ;;  %v283_v32 = vld [vmem:[%s1575_s17 + $0x18] sm:$0xff]  ;;  %v284_v34 = vld [vmem:[%s1575_s17 + $0x20] sm:$0xff]  ;;  %v285_v37 = vld [vmem:[%s1575_s17 + $0x28] sm:$0xff] }
  0x1a   : > { %1250 = vmatprep.subr.bf16.mxu0 %v1249_v21  ;;  %v286_v39 = vld [vmem:[%s1575_s17 + $0x30] sm:$0xff]  ;;  %v287_v40 = vld [vmem:[%s1575_s17 + $0x38] sm:$0xff]  ;;  %v288_v41 = vld [vmem:[%s1575_s17 + $0x40] sm:$0xff] }
  0x1b   : > { %1264 = vmatpush3.bf16.msra.mxu1 %v1261_v20  ;;  %v289_v42 = vld [vmem:[%s1575_s17 + $0x48] sm:$0xff]  ;;  %v290_v43 = vld [vmem:[%s1575_s17 + $0x50] sm:$0xff]  ;;  %v291_v44 = vld [vmem:[%s1575_s17 + $0x58] sm:$0xff] }
  0x1c   : > { %1266 = vmatprep.subr.bf16.mxu1 %v1265_v24  ;;  %v292_v45 = vld [vmem:[%s1575_s17 + $0x60] sm:$0xff]  ;;  %v293_v46 = vld [vmem:[%s1575_s17 + $0x68] sm:$0xff]  ;;  %v294_v47 = vld [vmem:[%s1575_s17 + $0x70] sm:$0xff] }
  0x1d   : > { %1252 = vmatpush3.bf16.msra.mxu0 %v1249_v21  ;;  %v295_v48 = vld [vmem:[%s1575_s17 + $0x78] sm:$0xff]  ;;  %v714_v1 = vld [vmem:[%s1816_s5 + $0x48] sm:$0xff]  ;;  %v715_v3 = vld [vmem:[%s1816_s5 + $0x50] sm:$0xff]  ;;  %s1374_s17 = scalar_lea.vmem %s1764_s9, 2048 }
  0x1e   : > { %1286 = vmatprep.subr.bf16.mxu0 %v1285_v55  ;;  %v1672_v2 = vpack.c.bf16 %v714_v1, %v713_v0  ;;  %v716_v4 = vld [vmem:[%s1816_s5 + $0x58] sm:$0xff]  ;;  %v717_v6 = vld [vmem:[%s1816_s5 + $0x60] sm:$0xff]  ;;  %v718_v7 = vld [vmem:[%s1816_s5 + $0x68] sm:$0xff]  ;;  %p1375_p11 = scmp.ne.s32.totalorder %s1764_s9, %s1374_s17  ;;  %p1382_p1 = scmp.lt.s32.totalorder %s1380_s18, %s1374_s17 }
  0x1f   : > { %1268 = vmatpush3.bf16.msra.mxu1 %v1265_v24  ;;  %v1682_v5 = vpack.c.bf16 %v716_v4, %v715_v3  ;;  %v1692_v8 = vpack.c.bf16 %v718_v7, %v717_v6  ;;  %v1700_v9 = vld [vmem:[%s1813_s2] ss:$0 sm:$0xff]  ;;  %v719_v58 = vld [vmem:[%s1816_s5 + $0x70] sm:$0xff]  ;;  %v720_v59 = vld [vmem:[%s1816_s5 + $0x78] sm:$0xff] }
  0x20   : > { %1102 = vmatmul.mubr.msk.f32.vlgmr.msra.gmra.mrb[0].mxu0 %vm311_vm0, %v281_v27  ;;  %1270 = vmatprep.subr.bf16.mxu1 %v1269_v28  ;;  %v989_v61 = vld [vmem:[%s1815_s4] ss:$0 sm:$0xff]  ;;  %p1376_p12 = pnand %p1375_p11, %p1519_p5  ;;  %p1383_p2 = por %p1382_p1, %p1381_p0 }
  0x21   : > { %1104 = vmatprep.mubr.msk.f32.mxu0 %vm311_vm0, %v282_v29  ;;  %1288 = vmatpush3.bf16.msra.mxu0 %v1285_v55 }
  0x22   : > { %1290 = vmatprep.subr.bf16.mxu0 %v1289_v57  ;;  %p1377_p13 = pneg %p1376_p12 }
  0x23   : > { %1272 = vmatpush3.bf16.msra.mxu1 %v1269_v28 }
  0x24   : > { %1105 = vmatmul.mubr.msk.f32.gmra.mrb[2].mxu0 %vm311_vm0, %v283_v32  ;;  %1274 = vmatprep.subr.bf16.mxu1 %v1273_v33  ;;  %p1384_p3 = pnand %p1383_p2, %p1377_p13 }
  0x25   : > { %1107 = vmatprep.mubr.msk.f32.mxu0 %vm311_vm0, %v284_v34  ;;  %1292 = vmatpush3.bf16.msra.mxu0 %v1289_v57 }
  0x26   : > { %1294 = vmatprep.subr.bf16.mxu0 %v1293_v60 }
  0x27   : > { %1276 = vmatpush3.bf16.msra.mxu1 %v1273_v33 }
  0x28   : > { %1108 = vmatmul.mubr.msk.f32.gmra.mrb[4].mxu0 %vm311_vm0, %v285_v37  ;;  %1278 = vmatprep.subr.bf16.mxu1 %v1277_v38 }
  0x29   : > { %1110 = vmatprep.mubr.msk.f32.mxu0 %vm311_vm0, %v286_v39  ;;  %1296 = vmatpush3.bf16.msra.mxu0 %v1293_v60 }
  0x2a   : > { %1298 = vmatprep.subr.bf16.mxu0 %v1663_v63 }
  0x2b   : > { %1280 = vmatpush3.bf16.msra.mxu1 %v1277_v38 }
  0x2c   : > { %1111 = vmatmul.mubr.msk.f32.gmra.mrb[6].mxu0 %vm311_vm0, %v287_v40  ;;  %1282 = vmatprep.subr.bf16.mxu1 %v1281_v51 }
  0x2d   : > { %1113 = vmatprep.mubr.msk.f32.mxu0 %vm311_vm0, %v288_v41  ;;  %1300 = vmatpush3.bf16.msra.mxu0 %v1663_v63 }
  0x2e   : > { %1302 = vmatprep.subr.bf16.mxu0 %v1672_v2 }
  0x2f   : > { %1284 = vmatpush3.bf16.msra.mxu1 %v1281_v51 }
  0x30   : > { %1114 = vmatmul.mubr.msk.f32.gmra.mrb[8].mxu0 %vm311_vm0, %v289_v42  ;;  %1317 = vmatprep.subr.bf16.mxu1 %v1285_v55 }
  0x31   : > { %1116 = vmatprep.mubr.msk.f32.mxu0 %vm311_vm0, %v290_v43  ;;  %1304 = vmatpush3.bf16.msra.mxu0 %v1672_v2 }
  0x32   : > { %1306 = vmatprep.subr.bf16.mxu0 %v1682_v5 }
  0x34   : > { %1117 = vmatmul.mubr.msk.f32.gmra.mrb[10].mxu0 %vm311_vm0, %v291_v44 }
  0x35   : > { %1119 = vmatprep.mubr.msk.f32.mxu0 %vm311_vm0, %v292_v45  ;;  %1308 = vmatpush3.bf16.msra.mxu0 %v1682_v5 }
  0x36   : > { %1310 = vmatprep.subr.bf16.mxu0 %v1692_v8 }
  0x38   : > { %1120 = vmatmul.mubr.msk.f32.gmra.mrb[12].mxu0 %vm311_vm0, %v293_v46 }
  0x39   : > { %1122 = vmatprep.mubr.msk.f32.mxu0 %vm311_vm0, %v294_v47  ;;  %1312 = vmatpush3.bf16.msra.mxu0 %v1692_v8 }
  0x3c   : > { %1123 = vmatmul.mubr.msk.f32.gmra.mrb[14].mxu0 %vm311_vm0, %v295_v48 }
  0xf3   : > { %v1103_v10 = vpop.f32.mrb[0].mxu0 }
  0xf4   : > { %v432_v11 = vadd.f32 %v1103_v10, %v1700_v9  ;;  %v426_v12 = vpop.f32.mrb[1].mxu0 }
  0xf5   : > { %v427_v13 = vadd.f32 %v1700_v9, %v426_v12 }
  0xf6   : > { %v506_v16 = vmax.f32 %v432_v11, 0.0 }
  0xf7   : > { %v1106_v14 = vpop.f32.mrb[2].mxu0  ;;  %v505_v15 = vmax.f32 %v427_v13, 0.0 }
  0xf8   : > { %v442_v17 = vadd.f32 %v1106_v14, %v1700_v9  ;;  %v436_v18 = vpop.f32.mrb[3].mxu0 }
  0xf9   : > { %v437_v19 = vadd.f32 %v1700_v9, %v436_v18  ;;  %1157 = vmatprep.mubr.f32.mxu1 %v505_v15 }
  0xfa   : > { %1158 = vmatmul.mubr.f32.vlgmr.msra.gmra.mrb[0].mxu1 %v506_v16  ;;  %v508_v22 = vmax.f32 %v442_v17, 0.0 }
  0xfb   : > { %v507_v20 = vmax.f32 %v437_v19, 0.0  ;;  %v1109_v21 = vpop.f32.mrb[4].mxu0  ;;  %1325 = vmatpush3.bf16.msra.mxu1 %v1285_v55 }
  0xfc   : > { %v452_v23 = vadd.f32 %v1109_v21, %v1700_v9  ;;  %v446_v24 = vpop.f32.mrb[5].mxu0  ;;  %1318 = vmatprep.subr.bf16.mxu1 %v1289_v57 }
  0xfd   : > { %v447_v25 = vadd.f32 %v1700_v9, %v446_v24  ;;  %1160 = vmatprep.mubr.f32.mxu1 %v507_v20 }
  0xfe   : > { %1161 = vmatmul.mubr.f32.gmra.mrb[2].mxu1 %v508_v22  ;;  %v510_v28 = vmax.f32 %v452_v23, 0.0 }
  0xff   : > { %v509_v26 = vmax.f32 %v447_v25, 0.0  ;;  %v1112_v27 = vpop.f32.mrb[6].mxu0  ;;  %1326 = vmatpush3.bf16.msra.mxu1 %v1289_v57 }
 0x100   : > { %v462_v29 = vadd.f32 %v1112_v27, %v1700_v9  ;;  %v456_v30 = vpop.f32.mrb[7].mxu0  ;;  %1319 = vmatprep.subr.bf16.mxu1 %v1293_v60 }
 0x101   : > { %v457_v31 = vadd.f32 %v1700_v9, %v456_v30  ;;  %1163 = vmatprep.mubr.f32.mxu1 %v509_v26 }
 0x102   : > { %1164 = vmatmul.mubr.f32.gmra.mrb[4].mxu1 %v510_v28  ;;  %v512_v34 = vmax.f32 %v462_v29, 0.0 }
 0x103   : > { %v511_v32 = vmax.f32 %v457_v31, 0.0  ;;  %v1115_v33 = vpop.f32.mrb[8].mxu0  ;;  %1327 = vmatpush3.bf16.msra.mxu1 %v1293_v60  ;;  %v1313_v60 = vpack.c.bf16 %v720_v59, %v719_v58 }
 0x104   : > { %v472_v35 = vadd.f32 %v1115_v33, %v1700_v9  ;;  %v466_v36 = vpop.f32.mrb[9].mxu0  ;;  %1320 = vmatprep.subr.bf16.mxu1 %v1663_v63 }
 0x105   : > { %v467_v37 = vadd.f32 %v1700_v9, %v466_v36  ;;  %1166 = vmatprep.mubr.f32.mxu1 %v511_v32  ;;  %1314 = vmatprep.subr.bf16.mxu0 %v1313_v60 }
 0x106   : > { %1167 = vmatmul.mubr.f32.gmra.mrb[6].mxu1 %v512_v34  ;;  %v514_v40 = vmax.f32 %v472_v35, 0.0  ;;  %1316 = vmatpush3.bf16.msra.mxu0 %v1313_v60 }
 0x107   : > { %v513_v38 = vmax.f32 %v467_v37, 0.0  ;;  %v1118_v39 = vpop.f32.mrb[10].mxu0  ;;  %1328 = vmatpush3.bf16.msra.mxu1 %v1663_v63 }
 0x108   : > { %v482_v41 = vadd.f32 %v1118_v39, %v1700_v9  ;;  %v476_v42 = vpop.f32.mrb[11].mxu0  ;;  %1321 = vmatprep.subr.bf16.mxu1 %v1672_v2 }
 0x109   : > { %v477_v43 = vadd.f32 %v1700_v9, %v476_v42  ;;  %1169 = vmatprep.mubr.f32.mxu1 %v513_v38 }
 0x10a   : > { %1170 = vmatmul.mubr.f32.gmra.mrb[8].mxu1 %v514_v40  ;;  %v516_v46 = vmax.f32 %v482_v41, 0.0 }
 0x10b   : > { %v515_v44 = vmax.f32 %v477_v43, 0.0  ;;  %v1121_v45 = vpop.f32.mrb[12].mxu0  ;;  %1329 = vmatpush3.bf16.msra.mxu1 %v1672_v2 }
 0x10c   : > { %v492_v47 = vadd.f32 %v1121_v45, %v1700_v9  ;;  %v486_v48 = vpop.f32.mrb[13].mxu0  ;;  %1322 = vmatprep.subr.bf16.mxu1 %v1682_v5 }
 0x10d   : > { %v487_v49 = vadd.f32 %v1700_v9, %v486_v48  ;;  %1172 = vmatprep.mubr.f32.mxu1 %v515_v44 }
 0x10e   : > { %1173 = vmatmul.mubr.f32.gmra.mrb[10].mxu1 %v516_v46  ;;  %v518_v52 = vmax.f32 %v492_v47, 0.0  ;;  %v990_v46 = vld [vmem:[%s1817_s6] ss:$0 sm:$0xff] }
 0x10f   : > { %v517_v50 = vmax.f32 %v487_v49, 0.0  ;;  %v1124_v51 = vpop.f32.mrb[14].mxu0  ;;  %1330 = vmatpush3.bf16.msra.mxu1 %v1682_v5 }
 0x110   : > { %v502_v53 = vadd.f32 %v1124_v51, %v1700_v9  ;;  %v496_v54 = vpop.f32.mrb[15].mxu0  ;;  %1323 = vmatprep.subr.bf16.mxu1 %v1692_v8 }
 0x111   : > { %v497_v55 = vadd.f32 %v1700_v9, %v496_v54  ;;  %1175 = vmatprep.mubr.f32.mxu1 %v517_v50 }
 0x112   : > { %1176 = vmatmul.mubr.f32.gmra.mrb[12].mxu1 %v518_v52  ;;  %v520_v57 = vmax.f32 %v502_v53, 0.0 }
 0x113   : > { %v519_v56 = vmax.f32 %v497_v55, 0.0  ;;  %1331 = vmatpush3.bf16.msra.mxu1 %v1692_v8 }
 0x114   : > { %1324 = vmatprep.subr.bf16.mxu1 %v1313_v60 }
 0x115   : > { %1178 = vmatprep.mubr.f32.mxu1 %v519_v56 }
 0x116   : > { %1179 = vmatmul.mubr.f32.gmra.mrb[14].mxu1 %v520_v57 }
 0x117   : > { %1332 = vmatpush3.bf16.msra.mxu1 %v1313_v60 }
 0x1cd   : > { %v1159_v62 = vpop.f32.mrb[0].mxu1 }
 0x1ce   : > { %v616_v63 = vadd.f32 %v1159_v62, %v989_v61  ;;  %v610_v0 = vpop.f32.mrb[1].mxu1 }
 0x1cf   : > { %v611_v1 = vadd.f32 %v989_v61, %v610_v0 }
 0x1d0   : > { %v690_v4 = vmax.f32 %v616_v63, 0.0 }
 0x1d1   : > { %v689_v2 = vmax.f32 %v611_v1, 0.0  ;;  %v1162_v3 = vpop.f32.mrb[2].mxu1 }
 0x1d2   : > { %v626_v5 = vadd.f32 %v1162_v3, %v989_v61  ;;  %v620_v6 = vpop.f32.mrb[3].mxu1 }
 0x1d3   : > { %v621_v7 = vadd.f32 %v989_v61, %v620_v6  ;;  %1213 = vmatprep.mubr.f32.mxu0 %v689_v2 }
 0x1d4   : > { %1214 = vmatmul.mubr.f32.vlgmr.msra.gmra.mrb[16].mxu0 %v690_v4  ;;  %v692_v10 = vmax.f32 %v626_v5, 0.0 }
 0x1d5   : > { %v691_v8 = vmax.f32 %v621_v7, 0.0  ;;  %v1165_v9 = vpop.f32.mrb[4].mxu1 }
 0x1d6   : > { %v636_v11 = vadd.f32 %v1165_v9, %v989_v61  ;;  %v630_v12 = vpop.f32.mrb[5].mxu1 }
 0x1d7   : > { %v631_v13 = vadd.f32 %v989_v61, %v630_v12  ;;  %1216 = vmatprep.mubr.f32.mxu0 %v691_v8 }
 0x1d8   : > { %1217 = vmatmul.mubr.f32.gmra.mrb[18].mxu0 %v692_v10  ;;  %v694_v16 = vmax.f32 %v636_v11, 0.0 }
 0x1d9   : > { %v693_v14 = vmax.f32 %v631_v13, 0.0  ;;  %v1168_v15 = vpop.f32.mrb[6].mxu1 }
 0x1da   : > { %v646_v17 = vadd.f32 %v1168_v15, %v989_v61  ;;  %v640_v18 = vpop.f32.mrb[7].mxu1 }
 0x1db   : > { %v641_v19 = vadd.f32 %v989_v61, %v640_v18  ;;  %1219 = vmatprep.mubr.f32.mxu0 %v693_v14 }
 0x1dc   : > { %1220 = vmatmul.mubr.f32.gmra.mrb[20].mxu0 %v694_v16  ;;  %v696_v22 = vmax.f32 %v646_v17, 0.0 }
 0x1dd   : > { %v695_v20 = vmax.f32 %v641_v19, 0.0  ;;  %v1171_v21 = vpop.f32.mrb[8].mxu1 }
 0x1de   : > { %v656_v23 = vadd.f32 %v1171_v21, %v989_v61  ;;  %v650_v24 = vpop.f32.mrb[9].mxu1 }
 0x1df   : > { %v651_v25 = vadd.f32 %v989_v61, %v650_v24  ;;  %1222 = vmatprep.mubr.f32.mxu0 %v695_v20 }
 0x1e0   : > { %1223 = vmatmul.mubr.f32.gmra.mrb[22].mxu0 %v696_v22  ;;  %v698_v28 = vmax.f32 %v656_v23, 0.0 }
 0x1e1   : > { %v697_v26 = vmax.f32 %v651_v25, 0.0  ;;  %v1174_v27 = vpop.f32.mrb[10].mxu1 }
 0x1e2   : > { %v666_v29 = vadd.f32 %v1174_v27, %v989_v61  ;;  %v660_v30 = vpop.f32.mrb[11].mxu1 }
 0x1e3   : > { %v661_v31 = vadd.f32 %v989_v61, %v660_v30  ;;  %1225 = vmatprep.mubr.f32.mxu0 %v697_v26 }
 0x1e4   : > { %1226 = vmatmul.mubr.f32.gmra.mrb[24].mxu0 %v698_v28  ;;  %v700_v34 = vmax.f32 %v666_v29, 0.0 }
 0x1e5   : > { %v699_v32 = vmax.f32 %v661_v31, 0.0  ;;  %v1177_v33 = vpop.f32.mrb[12].mxu1 }
 0x1e6   : > { %v676_v35 = vadd.f32 %v1177_v33, %v989_v61  ;;  %v670_v36 = vpop.f32.mrb[13].mxu1 }
 0x1e7   : > { %v671_v37 = vadd.f32 %v989_v61, %v670_v36  ;;  %1228 = vmatprep.mubr.f32.mxu0 %v699_v32 }
 0x1e8   : > { %1229 = vmatmul.mubr.f32.gmra.mrb[26].mxu0 %v700_v34  ;;  %v702_v40 = vmax.f32 %v676_v35, 0.0 }
 0x1e9   : > { %v701_v38 = vmax.f32 %v671_v37, 0.0  ;;  %v1180_v39 = vpop.f32.mrb[14].mxu1 }
 0x1ea   : > { %v686_v41 = vadd.f32 %v1180_v39, %v989_v61  ;;  %v680_v42 = vpop.f32.mrb[15].mxu1 }
 0x1eb   : > { %v681_v43 = vadd.f32 %v989_v61, %v680_v42  ;;  %1231 = vmatprep.mubr.f32.mxu1 %v701_v38 }
 0x1ec   : > { %1232 = vmatmul.mubr.f32.vlgmr.msra.gmra.mrb[16].mxu1 %v702_v40  ;;  %v704_v45 = vmax.f32 %v686_v41, 0.0 }
 0x1ed   : > { %v703_v44 = vmax.f32 %v681_v43, 0.0 }
 0x1ef   : > { %1234 = vmatprep.mubr.f32.mxu1 %v703_v44 }
 0x1f0   : > { %1235 = vmatmul.mubr.f32.gmra.mrb[18].mxu1 %v704_v45 }
 0x2a7   : > { %v1215_v47 = vpop.f32.mrb[16].mxu0 }
 0x2a8   : > { %v800_v48 = vadd.f32 %v1215_v47, %v990_v46  ;;  %v794_v49 = vpop.f32.mrb[17].mxu0 }
 0x2a9   : > { %v795_v50 = vadd.f32 %v990_v46, %v794_v49 }
 0x2aa   : > { %874 = vst [vmem:[%s1741_s29 + $0x8] sm:$0xff] %v800_v48 }
 0x2ab   : > { %873 = vst [vmem:[%s1741_s29] sm:$0xff] %v795_v50  ;;  %v1218_v51 = vpop.f32.mrb[18].mxu0 }
 0x2ac   : > { %v810_v52 = vadd.f32 %v1218_v51, %v990_v46  ;;  %v804_v53 = vpop.f32.mrb[19].mxu0 }
 0x2ad   : > { %v805_v54 = vadd.f32 %v990_v46, %v804_v53 }
 0x2ae   : > { %876 = vst [vmem:[%s1741_s29 + $0x18] sm:$0xff] %v810_v52 }
 0x2af   : > { %875 = vst [vmem:[%s1741_s29 + $0x10] sm:$0xff] %v805_v54  ;;  %v1221_v55 = vpop.f32.mrb[20].mxu0 }
 0x2b0   : > { %v820_v56 = vadd.f32 %v1221_v55, %v990_v46  ;;  %v814_v57 = vpop.f32.mrb[21].mxu0 }
 0x2b1   : > { %v815_v58 = vadd.f32 %v990_v46, %v814_v57 }
 0x2b2   : > { %878 = vst [vmem:[%s1741_s29 + $0x28] sm:$0xff] %v820_v56 }
 0x2b3   : > { %877 = vst [vmem:[%s1741_s29 + $0x20] sm:$0xff] %v815_v58  ;;  %v1224_v59 = vpop.f32.mrb[22].mxu0 }
 0x2b4   : > { %v830_v60 = vadd.f32 %v1224_v59, %v990_v46  ;;  %v824_v61 = vpop.f32.mrb[23].mxu0 }
 0x2b5   : > { %v825_v62 = vadd.f32 %v990_v46, %v824_v61 }
 0x2b6   : > { %880 = vst [vmem:[%s1741_s29 + $0x38] sm:$0xff] %v830_v60 }
 0x2b7   : > { %879 = vst [vmem:[%s1741_s29 + $0x30] sm:$0xff] %v825_v62  ;;  %v1227_v63 = vpop.f32.mrb[24].mxu0 }
 0x2b8   : > { %v840_v0 = vadd.f32 %v1227_v63, %v990_v46  ;;  %v834_v1 = vpop.f32.mrb[25].mxu0 }
 0x2b9   : > { %v835_v2 = vadd.f32 %v990_v46, %v834_v1 }
 0x2ba   : > { %882 = vst [vmem:[%s1741_s29 + $0x48] sm:$0xff] %v840_v0 }
 0x2bb   : > { %881 = vst [vmem:[%s1741_s29 + $0x40] sm:$0xff] %v835_v2  ;;  %v1230_v3 = vpop.f32.mrb[26].mxu0 }
 0x2bc   : > { %v850_v4 = vadd.f32 %v1230_v3, %v990_v46  ;;  %v844_v5 = vpop.f32.mrb[27].mxu0 }
 0x2bd   : > { %v845_v6 = vadd.f32 %v990_v46, %v844_v5 }
 0x2be   : > { %884 = vst [vmem:[%s1741_s29 + $0x58] sm:$0xff] %v850_v4 }
 0x2bf   : > { %883 = vst [vmem:[%s1741_s29 + $0x50] sm:$0xff] %v845_v6  ;;  %v1233_v7 = vpop.f32.mrb[16].mxu1 }
 0x2c0   : > { %v860_v8 = vadd.f32 %v1233_v7, %v990_v46  ;;  %v854_v9 = vpop.f32.mrb[17].mxu1 }
 0x2c1   : > { %v855_v10 = vadd.f32 %v990_v46, %v854_v9 }
 0x2c2   : > { %886 = vst [vmem:[%s1741_s29 + $0x68] sm:$0xff] %v860_v8 }
 0x2c3   : > { %885 = vst [vmem:[%s1741_s29 + $0x60] sm:$0xff] %v855_v10  ;;  %v1236_v11 = vpop.f32.mrb[18].mxu1 }
 0x2c4   : > { %v870_v12 = vadd.f32 %v1236_v11, %v990_v46  ;;  %v864_v13 = vpop.f32.mrb[19].mxu1 }
 0x2c5   : > { %v865_v14 = vadd.f32 %v990_v46, %v864_v13 }
 0x2c6   : > { %888 = vst [vmem:[%s1741_s29 + $0x78] sm:$0xff] %v870_v12 }
 0x2c7   : > { %887 = vst [vmem:[%s1741_s29 + $0x70] sm:$0xff] %v865_v14 }
 0x2c8   : > { %1387 = shalt.err (!%p1384_p3)
}
 0x2c9   : > { %s1388_s20 = scalar_lea.hbm %s1762_s15, 2048  ;;  %s1392_s23 = scalar_lea.hbm %s1818_s7, 4096 }
 0x2ca   : > { %p1389_p4 = scmp.ne.s32.totalorder %s1762_s15, %s1388_s20  ;;  %p1393_p9 = scmp.lt.u32.totalorder %s1762_s15, %s1818_s7 }
 0x2cb   : > { %p1394_p10 = scmp.lt.u32.totalorder %s1392_s23, %s1388_s20  ;;  %p1396_p12 = scmp.lt.u32.totalorder %s1388_s20, %s1762_s15 }
 0x2cc   : > { %p1390_p7 = pnand %p1389_p4, %p1519_p5 }
 0x2cd   : > { %p1395_p11 = por %p1394_p10, %p1393_p9 }
 0x2ce   : > { %p1391_p8 = pneg %p1390_p7 }
 0x2cf   : > { %p1397_p13 = por %p1396_p12, %p1395_p11 }
 0x2d1   : > { %p1398_p0 = pnand %p1397_p13, %p1391_p8 }
 0x2d3   : > { %1401 = shalt.err (!%p1398_p0)
}
 0x2d4   : > { %s1439_s13 = smov 128   ;;  %s1440_s14 = smov 8  }
 0x2d5   : > { %1333 = dma.vmem_to_hbm [thread:$0]  (%p1519_p5), %s1764_s9, 2048, %s1762_s15, %s1770_s28, %s1439_s13, %s1439_s13, %s1440_s14  }
 0x2d6 PF: > { %p1339_p1 = scmp.ge.s32.totalorder %s1436_s27, 2  ;;  %s918_s17 = sand.u32 1, %s1424_s24  }
 0x2d7   : > { %s919_s16 = scalar_lea.sflag [#allocation3], %s918_s17 }
 0x2d8   : > { %p1336_p2 = pnand %p1339_p1, %p1523_p6 }
 0x2da   : > { %1419 = dma.done.wait (!%p1336_p2), %s919_s16, 2048  }
 0x2db   : > { %1421 = vsyncadd (!%p1336_p2), %s919_s16, 4294965248  ;;  %p17_p3 = scmp.ge.s32.totalorder %s1506_s30, 4   ;;  %s1821_s24 = smov %s1428_s25 }
 0x2dc   : > { %s1822_s25 = smov %s1432_s26  ;;  %s1823_s26 = smov %s1517_s10 }
 0x2dd   : > { %s1824_s27 = smov %s1506_s30  ;;  %19 = sbr.rel (!%p17_p3) target bundleno = 3 (0x3), region = 83 }
 0x2e4   :  { %924 = vsyncpa [#allocation3], 1 }
 0x2e5   :  { %926 = vsyncpa [#allocation3 + $0x1], 1 }

</bundles_post_ra>
